<compile_context>
chip_gen: v5e
topology: v5e:2x2
jax: 0.10.0
libtpu: 0.0.40
codegen_flags: <defaults>
</compile_context>

<pallas_src>
import jax
import jax.numpy as jnp
from jax.experimental import pallas as pl
from jax.experimental.pallas import tpu as pltpu

LANE = 128
SUBLANE = 8          # f32 sublane granularity
MAX_TILE_ROWS = 2048  # 2048*128*4B = 1 MiB per f32 buffer; 3 bufs * 2 (dbl-buf) = 6 MiB VMEM


def _linear_kernel(w_ref, x0_ref, x1_ref, o_ref):
    # w_ref : SMEM (2,) f32  -> [w1, w2]
    # x0_ref, x1_ref, o_ref : VMEM (tile_rows, 128) lane-dense slabs
    x0 = x0_ref[...].astype(jnp.float32)
    x1 = x1_ref[...].astype(jnp.float32)
    o_ref[...] = (w_ref[0] * x0 + w_ref[1] * x1).astype(o_ref.dtype)


def linear_model(x, w1, w2):
    """x: (N, F) with F >= 2; w1, w2: shape-(1,) params. Returns (N, 1)."""
    n = x.shape[0]
    dtype = x.dtype

    # Keep weights in f32 (do NOT quantize params to the input dtype).
    w = jnp.concatenate([w1.reshape(1), w2.reshape(1)]).astype(jnp.float32)

    # --- lane-dense layout plumbing -------------------------------------
    # Only the first two feature columns are ever read; slice them out so the
    # kernel DMAs no unused feature data, then fold N onto the lane axis.
    rows = pl.cdiv(n, LANE)                       # rows of 128 lanes
    tile_rows = min(MAX_TILE_ROWS, rows)
    tile_rows = max(SUBLANE, (tile_rows // SUBLANE) * SUBLANE)  # multiple of 8
    rows_pad = pl.cdiv(rows, tile_rows) * tile_rows
    n_pad = rows_pad * LANE

    x0 = jnp.pad(x[:, 0], (0, n_pad - n)).reshape(rows_pad, LANE)
    x1 = jnp.pad(x[:, 1], (0, n_pad - n)).reshape(rows_pad, LANE)

    grid = (rows_pad // tile_rows,)

    out = pl.pallas_call(
        _linear_kernel,
        out_shape=jax.ShapeDtypeStruct((rows_pad, LANE), dtype),
        grid=grid,
        in_specs=[
            pl.BlockSpec(memory_space=pltpu.SMEM),            # scalar weights
            pl.BlockSpec((tile_rows, LANE), lambda i: (i, 0)),  # x[:,0] slab
            pl.BlockSpec((tile_rows, LANE), lambda i: (i, 0)),  # x[:,1] slab
        ],
        out_specs=pl.BlockSpec((tile_rows, LANE), lambda i: (i, 0)),
        compiler_params=pltpu.CompilerParams(
            dimension_semantics=("parallel",),       # megacore sharding on v7x
            vmem_limit_bytes=32 * 1024 * 1024,       # safe on v5e/v6e/v7x for 1 MiB tiles
        ),
    )(w, x0, x1)

    # Undo the layout plumbing: back to (N, 1).
    return out.reshape(n_pad)[:n].reshape(n, 1)


if __name__ == "__main__":
    key = jax.random.PRNGKey(0)
    kx, k1, k2 = jax.random.split(key, 3)

    # Small shapes consistent with the module: batch=8, features=2.
    x = jax.random.normal(kx, (8, 2), dtype=jnp.float32)
    # Deterministic parameter init (randn(1) analogue).
    w1 = jax.random.normal(k1, (1,), dtype=jnp.float32)
    w2 = jax.random.normal(k2, (1,), dtype=jnp.float32)

    out = linear_model(x, w1, w2)
    out = jax.block_until_ready(out)

    # Reference check in plain JAX.
    ref = w1 * x[:, 0].reshape(-1, 1) + w2 * x[:, 1].reshape(-1, 1)
    assert out.shape == (8, 1)
    assert jnp.allclose(out, ref, atol=1e-6, rtol=1e-6)

    # Quick larger-shape sanity check (exercises tiling / padding path).
    xb = jax.random.normal(kx, (5000, 3), dtype=jnp.float32)
    outb = jax.block_until_ready(linear_model(xb, w1, w2))
    refb = w1 * xb[:, 0].reshape(-1, 1) + w2 * xb[:, 1].reshape(-1, 1)
    assert outb.shape == (5000, 1)
    assert jnp.allclose(outb, refb, atol=1e-6, rtol=1e-6)

    print("KERNEL_OK")
</pallas_src>

<mosaic_0001>
module attributes {stable_mosaic.version = 11 : i64} {
  func.func @_linear_kernel(%arg0: i32, %arg1: memref<2xf32, #tpu.memory_space<smem>>, %arg2: memref<8x128xf32, #tpu.memory_space<vmem>>, %arg3: memref<8x128xf32, #tpu.memory_space<vmem>>, %arg4: memref<8x128xf32, #tpu.memory_space<vmem>>) attributes {dimension_semantics = [#tpu.dimension_semantics<parallel>], iteration_bounds = array<i64: 1>, scalar_prefetch = 0 : i64, scratch_operands = 0 : i64, tpu.core_type = #tpu.core_type<tc>, window_params = [{transform_indices = @transform_0, window_bounds = array<i64: 2>}, {transform_indices = @transform_1, window_bounds = array<i64: 8, 128>}, {transform_indices = @transform_2, window_bounds = array<i64: 8, 128>}, {transform_indices = @transform_3, window_bounds = array<i64: 8, 128>}]} {
    %c0 = arith.constant 0 : index
    %c0_0 = arith.constant 0 : index
    %0 = vector.load %arg2[%c0, %c0_0] : memref<8x128xf32, #tpu.memory_space<vmem>>, vector<8x128xf32>
    %c0_1 = arith.constant 0 : index
    %c0_2 = arith.constant 0 : index
    %1 = vector.load %arg3[%c0_1, %c0_2] : memref<8x128xf32, #tpu.memory_space<vmem>>, vector<8x128xf32>
    %c0_3 = arith.constant 0 : index
    %2 = memref.load %arg1[%c0_3] : memref<2xf32, #tpu.memory_space<smem>>
    %3 = vector.broadcast %2 : f32 to vector<8x128xf32>
    %4 = arith.mulf %3, %0 : vector<8x128xf32>
    %c1 = arith.constant 1 : index
    %5 = memref.load %arg1[%c1] : memref<2xf32, #tpu.memory_space<smem>>
    %6 = vector.broadcast %5 : f32 to vector<8x128xf32>
    %7 = arith.mulf %6, %1 : vector<8x128xf32>
    %8 = arith.addf %4, %7 : vector<8x128xf32>
    %c0_4 = arith.constant 0 : index
    %c0_5 = arith.constant 0 : index
    %9 = vector.load %arg4[%c0_4, %c0_5] : memref<8x128xf32, #tpu.memory_space<vmem>>, vector<8x128xf32>
    tpu.vector_store %arg4[%c0_4, %c0_5], %8 {strides = array<i32>} : memref<8x128xf32, #tpu.memory_space<vmem>>, vector<8x128xf32>,
    return
  }
  func.func @transform_0(%arg0: i32) -> i32 {
    %c0_i32 = arith.constant 0 : i32
    %c0_i32_0 = arith.constant 0 : i32
    return %c0_i32 : i32
  }
  func.func @transform_1(%arg0: i32) -> (i32, i32) {
    %c0_i32 = arith.constant 0 : i32
    %c0_i32_0 = arith.constant 0 : i32
    return %arg0, %c0_i32 : i32, i32
  }
  func.func @transform_2(%arg0: i32) -> (i32, i32) {
    %c0_i32 = arith.constant 0 : i32
    %c0_i32_0 = arith.constant 0 : i32
    return %arg0, %c0_i32 : i32, i32
  }
  func.func @transform_3(%arg0: i32) -> (i32, i32) {
    %c0_i32 = arith.constant 0 : i32
    %c0_i32_0 = arith.constant 0 : i32
    return %arg0, %c0_i32 : i32, i32
  }
}

</mosaic_0001>

<bundles_post_ra>
// kernel: tpu_custom_call.1
= control target key start
LH: loop header
LB: loop body
LE: loop exit
PB: predicated region body
PF: predicated region fallthrough
CT: control target
= control target key end

     0   :  { %8 = vsyncpa [#allocation5], 0  ;;  %s218_s0 = inlined_call_operand.hbm [shape: f32[2], index: 0, kind: input, shape index: {}]   ;;  %s219_s1 = inlined_call_operand.hbm [shape: f32[8,128], index: 1, kind: input, shape index: {}]   ;;  %s220_s2 = inlined_call_operand.hbm [shape: f32[8,128], index: 2, kind: input, shape index: {}]   ;;  %s221_s3 = inlined_call_operand.hbm [shape: f32[8,128], index: 3, kind: output, shape index: {}]  }
   0x1   :  { %9 = vsyncpa [#allocation3], 0 }
   0x2   :  { %10 = vsyncpa [#allocation8], 0 }
   0x3   :  { %11 = vsyncpa [#allocation4], 0  ;;  %s17_s14 = sshll.u32 %s218_s0, 4  ;;  %s26_s17 = sshll.u32 %s219_s1, 4  ;;  %s18_s14 = int_to_ptr.hbm [resolvable:$true] %s17_s14  ;;  %s27_s17 = int_to_ptr.hbm [resolvable:$true] %s26_s17 }
   0x4   :  { %s182_s18 = smov [#allocation2]   ;;  %s183_s19 = smov [#allocation6]  }
   0x5   :  { %20 = dma.hbm_to_smem %s18_s14, 16, %s182_s18, [#allocation5]  }
   0x6   :  { %s28_s20 = sshll.u32 %s183_s19, 4  ;;  %s37_s23 = sshll.u32 %s220_s2, 4  ;;  %s29_s20 = int_to_ptr.vmem [resolvable:$true] %s28_s20  ;;  %s38_s23 = int_to_ptr.hbm [resolvable:$true] %s37_s23 }
   0x7   :  { %31 = dma.hbm_to_vmem [thread:$0]  %s27_s17, 128, %s29_s20, [#allocation3]  }
   0x8   :  { %s184_s24 = smov [#allocation7]  }
   0x9   :  { %s39_s25 = sshll.u32 %s184_s24, 4  ;;  %s40_s25 = int_to_ptr.vmem [resolvable:$true] %s39_s25 }
   0xa   :  { %42 = dma.hbm_to_vmem [thread:$0]  %s38_s23, 128, %s40_s25, [#allocation8]  }
   0xb   :  { %174 = dma.done.wait [#allocation5], 16  }
   0xc   :  { %175 = vsyncadd [#allocation5], 4294967280 }
   0xd   :  { %176 = dma.done.wait [#allocation3], 128  }
   0xe   :  { %177 = vsyncadd [#allocation3], 4294967168 }
   0xf   :  { %178 = dma.done.wait [#allocation8], 128  }
  0x10   :  { %179 = vsyncadd [#allocation8], 4294967168 }
  0x11   :  { %55 = sfence }
  0x12   :  { %s58_s0 = sld [smem:[#allocation2]]  ;;  %v56_v0 = vld [vmem:[#allocation6] sm:$0xff]  ;;  %v57_v1 = vld [vmem:[#allocation7] sm:$0xff]  ;;  %s185_s2 = smov [#allocation9]  }
  0x13   :  { %s85_s1 = sld [smem:[#allocation2 + $0x1]]  ;;  %s71_s26 = sshll.u32 %s185_s2, 4  ;;  %s72_s26 = int_to_ptr.vmem [resolvable:$true] %s71_s26 }
  0x14   :  { %s73_s29 = sshll.u32 %s221_s3, 4  ;;  %s74_s29 = int_to_ptr.hbm [resolvable:$true] %s73_s29 }
  0x18   :  { %v59_v2 = vstv %s58_s0 }
  0x19   :  { %v60_v3 = vmul.f32 %v59_v2, %v56_v0  ;;  %v62_v4 = vstv %s85_s1 }
  0x1a   :  { %v63_v5 = vmul.f32 %v62_v4, %v57_v1 }
  0x1c   :  { %v64_v6 = vadd.f32 %v63_v5, %v60_v3 }
  0x1e   :  { %65 = vst [vmem:[#allocation9] sm:$0xff] %v64_v6 }
  0x1f   :  { %76 = dma.vmem_to_hbm [thread:$0]  %s72_s26, 128, %s74_s29, [#allocation4]  }
  0x20   :  { %180 = dma.done.wait [#allocation4], 128  }
  0x21   :  { %181 = vsyncadd [#allocation4], 4294967168 }
  0x22   :  { %81 = vsyncpa [#allocation3], 1 }
  0x23   :  { %82 = vsyncpa [#allocation8], 1 }
  0x24   :  { %83 = vsyncpa [#allocation4], 1 }
  0x25   :  { %84 = vsyncpa [#allocation5], 1 }

</bundles_post_ra>
